<compile_context>
chip_gen: v7x
topology: tpu7x:2x2x1
jax: 0.10.0
libtpu: 0.0.40
codegen_flags: <defaults>
</compile_context>

<pallas_src>
import jax
import jax.numpy as jnp
from jax.experimental import pallas as pl
from jax.experimental.pallas import tpu as pltpu

Z_DIM = 128
LEAKY_SLOPE = 0.01  # torch.nn.LeakyReLU default


# ----------------------------- shape metadata ------------------------------

def shape_params(shape):
    """Mirror of ShapeInfo: list of (paramtype, num_output)."""
    if shape == "bed":
        return [("scalar", 5), ("type", 3), ("integer", 3)]
    if shape == "chair":
        return [("scalar", 3), ("type", 4), ("type", 4), ("type", 4)]
    if shape == "shelf":
        return [("scalar", 3), ("integer", 5), ("integer", 5),
                ("binary", 1), ("binary", 1), ("binary", 1)]
    if shape == "table":
        return [("scalar", 4), ("binary", 1), ("type", 6)]
    if shape == "sofa":
        return [("scalar", 9), ("integer", 3), ("integer", 3), ("integer", 3)]
    raise ValueError(shape)


def _round_up(n, m):
    return -(-n // m) * m


def _num_tensorcores_per_chip():
    """Best-effort TC-per-chip query (2 on v7x, 1 on v5e/v6e). Never raises."""
    try:
        info = pltpu.get_tpu_info()
    except Exception:
        return 1
    for attr in ("num_cores", "num_tensorcores", "tensorcores_per_chip",
                 "cores_per_chip"):
        v = getattr(info, attr, None)
        if isinstance(v, int) and v > 0:
            return v
    return 1


# -------------------------------- kernel -----------------------------------

def _param_decoder_kernel(x_ref, w1_ref, b1_ref, w2_ref, b2_ref,
                          wh_ref, bh_ref, mask_ref, out_ref):
    # x tile arrives as f32; cast to bf16 on the VPU (hidden under the DMA).
    x = x_ref[...].astype(jnp.bfloat16)                       # (TB, 128)

    # fc1: Linear(128 -> 256) + LeakyReLU   (bf16 MXU, f32 accumulate)
    h1 = jnp.dot(x, w1_ref[...], preferred_element_type=jnp.float32) + b1_ref[...]
    h1 = jnp.where(h1 > 0, h1, LEAKY_SLOPE * h1)

    # fc2: Linear(256 -> 256) + LeakyReLU
    h2 = jnp.dot(h1.astype(jnp.bfloat16), w2_ref[...],
                 preferred_element_type=jnp.float32) + b2_ref[...]
    h2 = jnp.where(h2 > 0, h2, LEAKY_SLOPE * h2)

    # all heads fused: Linear(256 -> P_padded), then per-column sigmoid/identity
    o = jnp.dot(h2.astype(jnp.bfloat16), wh_ref[...],
                preferred_element_type=jnp.float32) + bh_ref[...]
    sig = 1.0 / (1.0 + jnp.exp(-o))            # exact sigmoid (EUP exp + div)
    out = jnp.where(mask_ref[...] > 0, sig, o)
    out_ref[...] = out.astype(out_ref.dtype)


def param_decoder_forward_packed(x, params, *, tb=512, out_dtype=jnp.float32):
    """x: (B, Z_DIM) float32.  Returns the lane-dense packed slab (B, P)."""
    w1, b1, w2, b2, wh, bh, sig_mask = params
    B = x.shape[0]
    P = wh.shape[1]

    # Batch tile: multiple of 8 (f32 sublane), capped at `tb` (default 512 —
    # the kernel is overhead/DMA bound, so bigger tiles amortize the ~0.35 us
    # per-grid-step cost).
    TB = min(tb, _round_up(max(B, 1), 8))

    # v7x: make sure the "parallel" batch axis has >=2 steps so both
    # TensorCores get work. No-op on v5e/v6e (single TC) and for tiny B.
    if pl.cdiv(B, TB) < 2 and B >= 16 and _num_tensorcores_per_chip() >= 2:
        TB = _round_up(pl.cdiv(B, 2), 8)

    grid = (pl.cdiv(B, TB),)        # ragged last block handled by Pallas;
                                    # no explicit pad / slice HBM passes.

    const = lambda shp: pl.BlockSpec(shp, lambda i: (0, 0))

    out = pl.pallas_call(
        _param_decoder_kernel,
        out_shape=jax.ShapeDtypeStruct((B, P), out_dtype),
        grid=grid,
        in_specs=[
            pl.BlockSpec((TB, Z_DIM), lambda i: (i, 0)),   # x: tiled over batch
            const(w1.shape), const(b1.shape),              # weights/biases:
            const(w2.shape), const(b2.shape),              #   VMEM-resident,
            const(wh.shape), const(bh.shape),              #   DMA'd once
            const(sig_mask.shape),
        ],
        out_specs=pl.BlockSpec((TB, P), lambda i: (i, 0)),
        compiler_params=pltpu.CompilerParams(
            dimension_semantics=("parallel",)),            # 2 TCs on v7x
    )(x, w1, b1, w2, b2, wh, bh, sig_mask)

    return out


def split_packed(out_packed, shape):
    """Slice the packed slab into the per-param list (torch API parity).
    Prefer consuming the packed slab directly when possible (lane-dense)."""
    outs, off = [], 0
    for _, n in shape_params(shape):
        outs.append(out_packed[:, off:off + n])
        off += n
    return outs


def param_decoder_forward(x, params, shape="table", *, tb=512,
                          out_dtype=jnp.float32):
    return split_packed(
        param_decoder_forward_packed(x, params, tb=tb, out_dtype=out_dtype),
        shape)


# --------------------------- parameter creation -----------------------------

def _linear_init(key, fan_in, fan_out):
    """Deterministic uniform(-1/sqrt(fan_in), 1/sqrt(fan_in)) like torch."""
    kw, kb = jax.random.split(key)
    bound = 1.0 / jnp.sqrt(jnp.float32(fan_in))
    # stored as (in, out) so kernel does x @ W
    w = jax.random.uniform(kw, (fan_in, fan_out), jnp.float32, -bound, bound)
    b = jax.random.uniform(kb, (fan_out,), jnp.float32, -bound, bound)
    return w, b


def make_params(key, shape="table"):
    specs = shape_params(shape)
    total = sum(n for _, n in specs)
    P = max(128, _round_up(total, 128))  # pad heads' output to lane multiple

    k1, k2, kh = jax.random.split(key, 3)
    w1, b1 = _linear_init(k1, Z_DIM, Z_DIM * 2)
    w2, b2 = _linear_init(k2, Z_DIM * 2, Z_DIM * 2)

    wh = jnp.zeros((Z_DIM * 2, P), jnp.float32)
    bh = jnp.zeros((P,), jnp.float32)
    sig = jnp.zeros((P,), jnp.float32)
    off = 0
    head_keys = jax.random.split(kh, len(specs))
    for (ptype, n), hk in zip(specs, head_keys):
        w_i, b_i = _linear_init(hk, Z_DIM * 2, n)
        wh = wh.at[:, off:off + n].set(w_i)
        bh = bh.at[off:off + n].set(b_i)
        if ptype in ("scalar", "binary"):
            sig = sig.at[off:off + n].set(1.0)
        off += n

    # weights in bf16 (halved DMA, bf16 MXU); biases/mask stay f32, as (1, N)
    return (w1.astype(jnp.bfloat16), b1.reshape(1, -1),
            w2.astype(jnp.bfloat16), b2.reshape(1, -1),
            wh.astype(jnp.bfloat16), bh.reshape(1, -1),
            sig.reshape(1, -1))


# --------------------------------- main -------------------------------------

if __name__ == "__main__":
    SHAPE = "table"   # params: scalar(4)+sigmoid, binary(1)+sigmoid, type(6)
    B = 8

    key = jax.random.PRNGKey(0)
    kx, kp = jax.random.split(key)
    x = jax.random.normal(kx, (B, Z_DIM), jnp.float32)
    params = make_params(kp, SHAPE)

    packed = param_decoder_forward_packed(x, params)
    packed = jax.block_until_ready(packed)
    outs = split_packed(packed, SHAPE)

    # pure-JAX reference (same bf16-weight / f32-accumulate dataflow as the
    # kernel; bf16 weight-quantization vs the f32 torch module is intentional)
    w1, b1, w2, b2, wh, bh, sig = params
    lrelu = lambda t: jnp.where(t > 0, t, LEAKY_SLOPE * t)
    xb = x.astype(jnp.bfloat16)
    h = lrelu(jnp.dot(xb, w1, preferred_element_type=jnp.float32) + b1)
    h = lrelu(jnp.dot(h.astype(jnp.bfloat16), w2,
                      preferred_element_type=jnp.float32) + b2)
    o = jnp.dot(h.astype(jnp.bfloat16), wh,
                preferred_element_type=jnp.float32) + bh
    ref_full = jnp.where(sig > 0, jax.nn.sigmoid(o), o)

    off = 0
    ok = True
    for (ptype, n), got in zip(shape_params(SHAPE), outs):
        ref = ref_full[:, off:off + n]
        off += n
        ok &= bool(jnp.allclose(got, ref, atol=1e-4, rtol=1e-4))
        assert got.shape == (B, n)
    assert ok, "mismatch vs reference"

    print("KERNEL_OK")
</pallas_src>

<mosaic_0001>
module attributes {stable_mosaic.version = 11 : i64} {
  func.func @_param_decoder_kernel(%arg0: i32, %arg1: memref<8x128xf32, #tpu.memory_space<vmem>>, %arg2: memref<128x256xbf16, #tpu.memory_space<vmem>>, %arg3: memref<1x256xf32, #tpu.memory_space<vmem>>, %arg4: memref<256x256xbf16, #tpu.memory_space<vmem>>, %arg5: memref<1x256xf32, #tpu.memory_space<vmem>>, %arg6: memref<256x128xbf16, #tpu.memory_space<vmem>>, %arg7: memref<1x128xf32, #tpu.memory_space<vmem>>, %arg8: memref<1x128xf32, #tpu.memory_space<vmem>>, %arg9: memref<8x128xf32, #tpu.memory_space<vmem>>) attributes {dimension_semantics = [#tpu.dimension_semantics<parallel>], iteration_bounds = array<i64: 1>, scalar_prefetch = 0 : i64, scratch_operands = 0 : i64, tpu.core_type = #tpu.core_type<tc>, window_params = [{transform_indices = @transform_0, window_bounds = array<i64: 8, 128>}, {pipeline_mode = #tpu.pipeline_mode<synchronous>, transform_indices = @transform_1, window_bounds = array<i64: 128, 256>}, {pipeline_mode = #tpu.pipeline_mode<synchronous>, transform_indices = @transform_2, window_bounds = array<i64: 1, 256>}, {pipeline_mode = #tpu.pipeline_mode<synchronous>, transform_indices = @transform_3, window_bounds = array<i64: 256, 256>}, {pipeline_mode = #tpu.pipeline_mode<synchronous>, transform_indices = @transform_4, window_bounds = array<i64: 1, 256>}, {pipeline_mode = #tpu.pipeline_mode<synchronous>, transform_indices = @transform_5, window_bounds = array<i64: 256, 128>}, {pipeline_mode = #tpu.pipeline_mode<synchronous>, transform_indices = @transform_6, window_bounds = array<i64: 1, 128>}, {pipeline_mode = #tpu.pipeline_mode<synchronous>, transform_indices = @transform_7, window_bounds = array<i64: 1, 128>}, {transform_indices = @transform_8, window_bounds = array<i64: 8, 128>}]} {
    %c0 = arith.constant 0 : index
    %c0_0 = arith.constant 0 : index
    %0 = vector.load %arg1[%c0, %c0_0] : memref<8x128xf32, #tpu.memory_space<vmem>>, vector<8x128xf32>
    %1 = arith.truncf %0 : vector<8x128xf32> to vector<8x128xbf16>
    %c0_1 = arith.constant 0 : index
    %c0_2 = arith.constant 0 : index
    %2 = vector.load %arg2[%c0_1, %c0_2] : memref<128x256xbf16, #tpu.memory_space<vmem>>, vector<128x256xbf16>
    %cst = arith.constant dense<0.000000e+00> : vector<8x256xf32>
    %3 = tpu.matmul %1, %2, %cst {dimension_numbers = #tpu.dot_dimension_numbers<[1], [0], [0], [1], [0, 0, 1, 1], [], []>} : vector<8x128xbf16>, vector<128x256xbf16>, vector<8x256xf32> -> vector<8x256xf32>
    %c0_3 = arith.constant 0 : index
    %c0_4 = arith.constant 0 : index
    %4 = vector.load %arg3[%c0_3, %c0_4] : memref<1x256xf32, #tpu.memory_space<vmem>>, vector<1x256xf32>
    %5 = vector.broadcast %4 : vector<1x256xf32> to vector<8x256xf32>
    %6 = arith.addf %3, %5 : vector<8x256xf32>
    %cst_5 = arith.constant 0.000000e+00 : f32
    %7 = vector.broadcast %cst_5 : f32 to vector<8x256xf32>
    %8 = arith.cmpf ogt, %6, %7 : vector<8x256xf32>
    %cst_6 = arith.constant 0.00999999977 : f32
    %9 = vector.broadcast %cst_6 : f32 to vector<8x256xf32>
    %10 = arith.mulf %9, %6 : vector<8x256xf32>
    %11 = arith.select %8, %6, %10 : vector<8x256xi1>, vector<8x256xf32>
    %12 = arith.truncf %11 : vector<8x256xf32> to vector<8x256xbf16>
    %c0_7 = arith.constant 0 : index
    %c0_8 = arith.constant 0 : index
    %13 = vector.load %arg4[%c0_7, %c0_8] : memref<256x256xbf16, #tpu.memory_space<vmem>>, vector<256x256xbf16>
    %cst_9 = arith.constant dense<0.000000e+00> : vector<8x256xf32>
    %14 = tpu.matmul %12, %13, %cst_9 {dimension_numbers = #tpu.dot_dimension_numbers<[1], [0], [0], [1], [0, 0, 1, 1], [], []>} : vector<8x256xbf16>, vector<256x256xbf16>, vector<8x256xf32> -> vector<8x256xf32>
    %c0_10 = arith.constant 0 : index
    %c0_11 = arith.constant 0 : index
    %15 = vector.load %arg5[%c0_10, %c0_11] : memref<1x256xf32, #tpu.memory_space<vmem>>, vector<1x256xf32>
    %16 = vector.broadcast %15 : vector<1x256xf32> to vector<8x256xf32>
    %17 = arith.addf %14, %16 : vector<8x256xf32>
    %cst_12 = arith.constant 0.000000e+00 : f32
    %18 = vector.broadcast %cst_12 : f32 to vector<8x256xf32>
    %19 = arith.cmpf ogt, %17, %18 : vector<8x256xf32>
    %cst_13 = arith.constant 0.00999999977 : f32
    %20 = vector.broadcast %cst_13 : f32 to vector<8x256xf32>
    %21 = arith.mulf %20, %17 : vector<8x256xf32>
    %22 = arith.select %19, %17, %21 : vector<8x256xi1>, vector<8x256xf32>
    %23 = arith.truncf %22 : vector<8x256xf32> to vector<8x256xbf16>
    %c0_14 = arith.constant 0 : index
    %c0_15 = arith.constant 0 : index
    %24 = vector.load %arg6[%c0_14, %c0_15] : memref<256x128xbf16, #tpu.memory_space<vmem>>, vector<256x128xbf16>
    %cst_16 = arith.constant dense<0.000000e+00> : vector<8x128xf32>
    %25 = tpu.matmul %23, %24, %cst_16 {dimension_numbers = #tpu.dot_dimension_numbers<[1], [0], [0], [1], [0, 0, 1, 1], [], []>} : vector<8x256xbf16>, vector<256x128xbf16>, vector<8x128xf32> -> vector<8x128xf32>
    %c0_17 = arith.constant 0 : index
    %c0_18 = arith.constant 0 : index
    %26 = vector.load %arg7[%c0_17, %c0_18] : memref<1x128xf32, #tpu.memory_space<vmem>>, vector<1x128xf32>
    %27 = vector.broadcast %26 : vector<1x128xf32> to vector<8x128xf32>
    %28 = arith.addf %25, %27 : vector<8x128xf32>
    %cst_19 = arith.constant 0.000000e+00 : f32
    %29 = vector.broadcast %cst_19 : f32 to vector<8x128xf32>
    %30 = arith.subf %29, %28 : vector<8x128xf32>
    %31 = math.exp %30 : vector<8x128xf32>
    %cst_20 = arith.constant 1.000000e+00 : f32
    %32 = vector.broadcast %cst_20 : f32 to vector<8x128xf32>
    %33 = arith.addf %32, %31 : vector<8x128xf32>
    %cst_21 = arith.constant 1.000000e+00 : f32
    %34 = vector.broadcast %cst_21 : f32 to vector<8x128xf32>
    %35 = arith.divf %34, %33 : vector<8x128xf32>
    %c0_22 = arith.constant 0 : index
    %c0_23 = arith.constant 0 : index
    %36 = vector.load %arg8[%c0_22, %c0_23] : memref<1x128xf32, #tpu.memory_space<vmem>>, vector<1x128xf32>
    %cst_24 = arith.constant 0.000000e+00 : f32
    %37 = vector.broadcast %cst_24 : f32 to vector<1x128xf32>
    %38 = arith.cmpf ogt, %36, %37 : vector<1x128xf32>
    %39 = vector.shape_cast %38 : vector<1x128xi1> to vector<1x128xi1>
    %40 = vector.broadcast %39 : vector<1x128xi1> to vector<8x128xi1>
    %41 = arith.select %40, %35, %28 : vector<8x128xi1>, vector<8x128xf32>
    %c0_25 = arith.constant 0 : index
    %c0_26 = arith.constant 0 : index
    %42 = vector.load %arg9[%c0_25, %c0_26] : memref<8x128xf32, #tpu.memory_space<vmem>>, vector<8x128xf32>
    tpu.vector_store %arg9[%c0_25, %c0_26], %41 {strides = array<i32>} : memref<8x128xf32, #tpu.memory_space<vmem>>, vector<8x128xf32>,
    return
  }
  func.func @transform_0(%arg0: i32) -> (i32, i32) {
    %c0_i32 = arith.constant 0 : i32
    %c0_i32_0 = arith.constant 0 : i32
    return %arg0, %c0_i32 : i32, i32
  }
  func.func @transform_1(%arg0: i32) -> (i32, i32) {
    %c0_i32 = arith.constant 0 : i32
    %c0_i32_0 = arith.constant 0 : i32
    %c0_i32_1 = arith.constant 0 : i32
    return %c0_i32, %c0_i32_0 : i32, i32
  }
  func.func @transform_2(%arg0: i32) -> (i32, i32) {
    %c0_i32 = arith.constant 0 : i32
    %c0_i32_0 = arith.constant 0 : i32
    %c0_i32_1 = arith.constant 0 : i32
    return %c0_i32, %c0_i32_0 : i32, i32
  }
  func.func @transform_3(%arg0: i32) -> (i32, i32) {
    %c0_i32 = arith.constant 0 : i32
    %c0_i32_0 = arith.constant 0 : i32
    %c0_i32_1 = arith.constant 0 : i32
    return %c0_i32, %c0_i32_0 : i32, i32
  }
  func.func @transform_4(%arg0: i32) -> (i32, i32) {
    %c0_i32 = arith.constant 0 : i32
    %c0_i32_0 = arith.constant 0 : i32
    %c0_i32_1 = arith.constant 0 : i32
    return %c0_i32, %c0_i32_0 : i32, i32
  }
  func.func @transform_5(%arg0: i32) -> (i32, i32) {
    %c0_i32 = arith.constant 0 : i32
    %c0_i32_0 = arith.constant 0 : i32
    %c0_i32_1 = arith.constant 0 : i32
    return %c0_i32, %c0_i32_0 : i32, i32
  }
  func.func @transform_6(%arg0: i32) -> (i32, i32) {
    %c0_i32 = arith.constant 0 : i32
    %c0_i32_0 = arith.constant 0 : i32
    %c0_i32_1 = arith.constant 0 : i32
    return %c0_i32, %c0_i32_0 : i32, i32
  }
  func.func @transform_7(%arg0: i32) -> (i32, i32) {
    %c0_i32 = arith.constant 0 : i32
    %c0_i32_0 = arith.constant 0 : i32
    %c0_i32_1 = arith.constant 0 : i32
    return %c0_i32, %c0_i32_0 : i32, i32
  }
  func.func @transform_8(%arg0: i32) -> (i32, i32) {
    %c0_i32 = arith.constant 0 : i32
    %c0_i32_0 = arith.constant 0 : i32
    return %arg0, %c0_i32 : i32, i32
  }
}

</mosaic_0001>

<bundles_post_ra>
// kernel: tpu_custom_call.1
= control target key start
LH: loop header
LB: loop body
LE: loop exit
PB: predicated region body
PF: predicated region fallthrough
CT: control target
= control target key end

     0   :  { %13 = vsyncpa [#allocation3], 0  ;;  %s1151_s0 = inlined_call_operand.hbm [shape: f32[8,128], index: 0, kind: input, shape index: {}]   ;;  %s1152_s1 = inlined_call_operand.hbm [shape: bf16[128,256], index: 1, kind: input, shape index: {}]   ;;  %s1153_s2 = inlined_call_operand.vmem [shape: f32[1,256], index: 2, kind: input, shape index: {}]   ;;  %s1154_s3 = inlined_call_operand.hbm [shape: bf16[256,256], index: 3, kind: input, shape index: {}]   ;;  %s1155_s4 = inlined_call_operand.vmem [shape: f32[1,256], index: 4, kind: input, shape index: {}]   ;;  %s1156_s5 = inlined_call_operand.hbm [shape: bf16[256,128], index: 5, kind: input, shape index: {}]   ;;  %s1157_s6 = inlined_call_operand.vmem [shape: f32[1,128], index: 6, kind: input, shape index: {}]   ;;  %s1158_s7 = inlined_call_operand.vmem [shape: f32[1,128], index: 7, kind: input, shape index: {}]   ;;  %s1159_s8 = inlined_call_operand.hbm [shape: f32[8,128], index: 8, kind: output, shape index: {}]  }
   0x1   :  { %14 = vsyncpa [#allocation6], 0 }
   0x2   :  { %15 = vsyncpa [#allocation9], 0 }
   0x3   :  { %16 = vsyncpa [#allocation4], 0  ;;  %s1011_s27 = smov [#allocation5]   ;;  %s893_s9 = scalar_lea.hbm %s1152_s1, 2048 }
   0x4   :  { %s32_s28 = sshll.u32 %s1011_s27, 4  ;;  %p894_p0 = scmp.ne.s32.totalorder %s1152_s1, %s893_s9  ;;  %s33_s28 = int_to_ptr.vmem [resolvable:$true] %s32_s28 }
   0x5   :  { %p897_p1 = scmp.lt.u32.totalorder %s893_s9, %s1152_s1 }
   0x7   :  { %p899_p2 = pnand %p897_p1, %p894_p0 }
   0x9   :  { %902 = shalt.err (!%p899_p2)
}
   0xa   :  { %s903_s14 = scalar_lea.vmem %s33_s28, 2048  ;;  %p908_p4 = scmp.lt.s32.totalorder %s33_s28, %s33_s28 }
   0xb   :  { %p904_p3 = scmp.ne.s32.totalorder %s33_s28, %s903_s14  ;;  %p909_p5 = scmp.lt.s32.totalorder %s903_s14, %s903_s14 }
   0xd   :  { %p910_p6 = por %p909_p5, %p908_p4 }
   0xf   :  { %p911_p7 = pnand %p910_p6, %p904_p3 }
  0x11   :  { %914 = shalt.err (!%p911_p7)
}
  0x12   :  { %s1012_s15 = smov 128   ;;  %s1013_s16 = smov 8  }
  0x13   :  { %38 = dma.hbm_to_vmem [thread:$0]  %s1152_s1, 2048, %s33_s28, [#allocation6], %s1012_s15, %s1012_s15, %s1013_s16  }
  0x14   :  { %s1014_s19 = smov [#allocation2]   ;;  %s1015_s21 = smov [#allocation7]  }
  0x15   :  { %s23_s20 = sshll.u32 %s1014_s19, 4  ;;  %s46_s22 = sshll.u32 %s1015_s21, 4  ;;  %s24_s20 = int_to_ptr.vmem [resolvable:$true] %s23_s20  ;;  %s47_s22 = int_to_ptr.vmem [resolvable:$true] %s46_s22 }
  0x16   :  { %s915_s25 = scalar_lea.hbm %s1151_s0, 128 }
  0x17   :  { %p916_p8 = scmp.ne.s32.totalorder %s1151_s0, %s915_s25  ;;  %p919_p9 = scmp.lt.u32.totalorder %s915_s25, %s1151_s0 }
  0x19   :  { %p921_p10 = pnand %p919_p9, %p916_p8 }
  0x1b   :  { %924 = shalt.err (!%p921_p10)
}
  0x1c   :  { %s925_s1 = scalar_lea.vmem %s24_s20, 128  ;;  %p930_p12 = scmp.lt.s32.totalorder %s24_s20, %s24_s20 }
  0x1d   :  { %p926_p11 = scmp.ne.s32.totalorder %s24_s20, %s925_s1  ;;  %p931_p13 = scmp.lt.s32.totalorder %s925_s1, %s925_s1 }
  0x1f   :  { %p932_p0 = por %p931_p13, %p930_p12 }
  0x21   :  { %p933_p1 = pnand %p932_p0, %p926_p11 }
  0x23   :  { %936 = shalt.err (!%p933_p1)
}
  0x24   :  { %26 = dma.hbm_to_vmem [thread:$0]  %s1151_s0, 128, %s24_s20, [#allocation3]  }
  0x25   :  { %s937_s12 = scalar_lea.hbm %s1154_s3, 4096 }
  0x26   :  { %p938_p2 = scmp.ne.s32.totalorder %s1154_s3, %s937_s12  ;;  %p941_p3 = scmp.lt.u32.totalorder %s937_s12, %s1154_s3 }
  0x28   :  { %p943_p4 = pnand %p941_p3, %p938_p2 }
  0x2a   :  { %946 = shalt.err (!%p943_p4)
}
  0x2b   :  { %s947_s19 = scalar_lea.vmem %s47_s22, 4096  ;;  %p952_p6 = scmp.lt.s32.totalorder %s47_s22, %s47_s22 }
  0x2c   :  { %p948_p5 = scmp.ne.s32.totalorder %s47_s22, %s947_s19  ;;  %p953_p7 = scmp.lt.s32.totalorder %s947_s19, %s947_s19 }
  0x2e   :  { %p954_p8 = por %p953_p7, %p952_p6 }
  0x30   :  { %p955_p9 = pnand %p954_p8, %p948_p5 }
  0x32   :  { %958 = shalt.err (!%p955_p9)
}
  0x33   :  { %52 = dma.hbm_to_vmem [thread:$0]  %s1154_s3, 4096, %s47_s22, [#allocation6], %s1012_s15, %s1012_s15, %s1013_s16  }
  0x34   :  { %s1016_s21 = smov [#allocation8]   ;;  %s959_s26 = scalar_lea.hbm %s1156_s5, 2048 }
  0x35   :  { %s60_s23 = sshll.u32 %s1016_s21, 4  ;;  %p960_p10 = scmp.ne.s32.totalorder %s1156_s5, %s959_s26  ;;  %s61_s23 = int_to_ptr.vmem [resolvable:$true] %s60_s23 }
  0x36   :  { %p963_p11 = scmp.lt.u32.totalorder %s959_s26, %s1156_s5 }
  0x38   :  { %p965_p12 = pnand %p963_p11, %p960_p10 }
  0x3a   :  { %968 = shalt.err (!%p965_p12)
}
  0x3b   :  { %s969_s28 = scalar_lea.vmem %s61_s23, 2048  ;;  %p974_p0 = scmp.lt.s32.totalorder %s61_s23, %s61_s23 }
  0x3c   :  { %p970_p13 = scmp.ne.s32.totalorder %s61_s23, %s969_s28  ;;  %p975_p1 = scmp.lt.s32.totalorder %s969_s28, %s969_s28 }
  0x3e   :  { %p976_p2 = por %p975_p1, %p974_p0 }
  0x40   :  { %p977_p3 = pnand %p976_p2, %p970_p13 }
  0x42   :  { %980 = shalt.err (!%p977_p3)
}
  0x43   :  { %s1017_s3 = smov 64   ;;  %s1018_s15 = smov 4  }
  0x44   :  { %66 = dma.hbm_to_vmem [thread:$0]  %s1156_s5, 2048, %s61_s23, [#allocation9], %s1017_s3, %s1017_s3, %s1018_s15  }
  0x45   :  { %1003 = dma.done.wait [#allocation3], 128  }
  0x46   :  { %1004 = vsyncadd [#allocation3], 4294967168 }
  0x47   :  { %1005 = dma.done.wait [#allocation6], 6144  }
  0x48   :  { %1006 = vsyncadd [#allocation6], 4294961152 }
  0x49   :  { %1007 = dma.done.wait [#allocation9], 2048  }
  0x4a   :  { %1008 = vsyncadd [#allocation9], 4294965248  ;;  %v1019_v0 = vmov 0   ;;  %v801_v1 = vld [vmem:[#allocation5 + $0x4] ss:$8 sps:$4 sm:$0xff]   ;;  %v84_v26 = vld [vmem:[#allocation2] sm:$0xff]  ;;  %v104_v63 = vlaneseq }
  0x4b   :  { %226 = vmatprep.mubr.bf16.mxu0 %v1019_v0  ;;  %v803_v2 = vld [vmem:[#allocation5] ss:$8 sps:$4 sm:$0xff]   ;;  %194 = vmatprep.subr.bf16.mxu0 %v801_v1  ;;  %v804_v3 = vld [vmem:[#allocation5 + $0x14] ss:$8 sps:$4 sm:$0xff]   ;;  %v806_v4 = vld [vmem:[#allocation5 + $0x10] ss:$8 sps:$4 sm:$0xff]   ;;  %v85_v30 = vpack.c.bf16 %v84_v26, %v84_v26 }
  0x4c   :  { %195 = vmatpush1.bf16.msra.mxu0 %v803_v2  ;;  %v807_v5 = vld [vmem:[#allocation5 + $0x24] ss:$8 sps:$4 sm:$0xff]   ;;  %v809_v6 = vld [vmem:[#allocation5 + $0x20] ss:$8 sps:$4 sm:$0xff]   ;;  %v810_v7 = vld [vmem:[#allocation5 + $0x34] ss:$8 sps:$4 sm:$0xff]  }
  0x4d   :  { %196 = vmatprep.subr.bf16.mxu0 %v804_v3  ;;  %v812_v8 = vld [vmem:[#allocation5 + $0x30] ss:$8 sps:$4 sm:$0xff]   ;;  %v813_v9 = vld [vmem:[#allocation5 + $0x44] ss:$8 sps:$4 sm:$0xff]   ;;  %v827_v11 = vld [vmem:[#allocation7] ss:$8 sps:$4 sm:$0xff]  }
  0x4e   :  { %v825_v10 = vld [vmem:[#allocation7 + $0x4] ss:$8 sps:$4 sm:$0xff]   ;;  %v828_v12 = vld [vmem:[#allocation7 + $0x14] ss:$8 sps:$4 sm:$0xff]   ;;  %v815_v13 = vld [vmem:[#allocation5 + $0x40] ss:$8 sps:$4 sm:$0xff]  }
  0x4f   :  { %447 = vmatprep.subr.bf16.mxu1 %v825_v10  ;;  %v830_v14 = vld [vmem:[#allocation7 + $0x10] ss:$8 sps:$4 sm:$0xff]   ;;  %v816_v15 = vld [vmem:[#allocation5 + $0x54] ss:$8 sps:$4 sm:$0xff]   ;;  %v831_v16 = vld [vmem:[#allocation7 + $0x24] ss:$8 sps:$4 sm:$0xff]  }
  0x50   :  { %197 = vmatpush1.bf16.msra.mxu0 %v806_v4  ;;  %448 = vmatpush1.bf16.msra.mxu1 %v827_v11  ;;  %v818_v17 = vld [vmem:[#allocation5 + $0x50] ss:$8 sps:$4 sm:$0xff]   ;;  %v833_v18 = vld [vmem:[#allocation7 + $0x20] ss:$8 sps:$4 sm:$0xff]   ;;  %v819_v19 = vld [vmem:[#allocation5 + $0x64] ss:$8 sps:$4 sm:$0xff]  }
  0x51   :  { %198 = vmatprep.subr.bf16.mxu0 %v807_v5  ;;  %449 = vmatprep.subr.bf16.mxu1 %v828_v12  ;;  %v834_v20 = vld [vmem:[#allocation7 + $0x34] ss:$8 sps:$4 sm:$0xff]   ;;  %v821_v21 = vld [vmem:[#allocation5 + $0x60] ss:$8 sps:$4 sm:$0xff]   ;;  %v836_v22 = vld [vmem:[#allocation7 + $0x30] ss:$8 sps:$4 sm:$0xff]  }
  0x52   :  { %v822_v23 = vld [vmem:[#allocation5 + $0x74] ss:$8 sps:$4 sm:$0xff]   ;;  %v837_v24 = vld [vmem:[#allocation7 + $0x44] ss:$8 sps:$4 sm:$0xff]   ;;  %v824_v25 = vld [vmem:[#allocation5 + $0x70] ss:$8 sps:$4 sm:$0xff]  }
  0x53   :  { %v839_v27 = vld [vmem:[#allocation7 + $0x40] ss:$8 sps:$4 sm:$0xff]   ;;  %v840_v28 = vld [vmem:[#allocation7 + $0x54] ss:$8 sps:$4 sm:$0xff]   ;;  %v842_v29 = vld [vmem:[#allocation7 + $0x50] ss:$8 sps:$4 sm:$0xff]  }
  0x54   :  { %199 = vmatpush1.bf16.msra.mxu0 %v809_v6  ;;  %450 = vmatpush1.bf16.msra.mxu1 %v830_v14  ;;  %v843_v31 = vld [vmem:[#allocation7 + $0x64] ss:$8 sps:$4 sm:$0xff]   ;;  %v845_v32 = vld [vmem:[#allocation7 + $0x60] ss:$8 sps:$4 sm:$0xff]   ;;  %v846_v33 = vld [vmem:[#allocation7 + $0x74] ss:$8 sps:$4 sm:$0xff]  }
  0x55   :  { %200 = vmatprep.subr.bf16.mxu0 %v810_v7  ;;  %451 = vmatprep.subr.bf16.mxu1 %v831_v16  ;;  %v848_v34 = vld [vmem:[#allocation7 + $0x70] ss:$8 sps:$4 sm:$0xff]   ;;  %v849_v35 = vld [vmem:[#allocation7 + $0x84] ss:$8 sps:$4 sm:$0xff]   ;;  %v851_v36 = vld [vmem:[#allocation7 + $0x80] ss:$8 sps:$4 sm:$0xff]  }
  0x56   :  { %v852_v37 = vld [vmem:[#allocation7 + $0x94] ss:$8 sps:$4 sm:$0xff]   ;;  %v854_v38 = vld [vmem:[#allocation7 + $0x90] ss:$8 sps:$4 sm:$0xff]   ;;  %v855_v39 = vld [vmem:[#allocation7 + $0xa4] ss:$8 sps:$4 sm:$0xff]  }
  0x57   :  { %v857_v40 = vld [vmem:[#allocation7 + $0xa0] ss:$8 sps:$4 sm:$0xff]   ;;  %v858_v41 = vld [vmem:[#allocation7 + $0xb4] ss:$8 sps:$4 sm:$0xff]   ;;  %v860_v42 = vld [vmem:[#allocation7 + $0xb0] ss:$8 sps:$4 sm:$0xff]  }
  0x58   :  { %201 = vmatpush1.bf16.msra.mxu0 %v812_v8  ;;  %452 = vmatpush1.bf16.msra.mxu1 %v833_v18  ;;  %v861_v43 = vld [vmem:[#allocation7 + $0xc4] ss:$8 sps:$4 sm:$0xff]   ;;  %v863_v44 = vld [vmem:[#allocation7 + $0xc0] ss:$8 sps:$4 sm:$0xff]   ;;  %v864_v45 = vld [vmem:[#allocation7 + $0xd4] ss:$8 sps:$4 sm:$0xff]  }
  0x59   :  { %202 = vmatprep.subr.bf16.mxu0 %v813_v9  ;;  %453 = vmatprep.subr.bf16.mxu1 %v834_v20  ;;  %v866_v46 = vld [vmem:[#allocation7 + $0xd0] ss:$8 sps:$4 sm:$0xff]   ;;  %v867_v47 = vld [vmem:[#allocation7 + $0xe4] ss:$8 sps:$4 sm:$0xff]   ;;  %v869_v48 = vld [vmem:[#allocation7 + $0xe0] ss:$8 sps:$4 sm:$0xff]  }
  0x5a   :  { %v870_v49 = vld [vmem:[#allocation7 + $0xf4] ss:$8 sps:$4 sm:$0xff]   ;;  %v872_v50 = vld [vmem:[#allocation7 + $0xf0] ss:$8 sps:$4 sm:$0xff]   ;;  %v873_v51 = vld [vmem:[#allocation8 + $0x40] sm:$0xff]   ;;  %v105_v1 = vshrl.u32 %v104_v63, 7 }
  0x5b   :  { %v874_v52 = vld [vmem:[#allocation8] sm:$0xff]   ;;  %v875_v53 = vld [vmem:[#allocation8 + $0x48] sm:$0xff]   ;;  %v877_v55 = vld [vmem:[#allocation8 + $0x50] sm:$0xff]  }
  0x5c   :  { %203 = vmatpush1.bf16.msra.mxu0 %v815_v13  ;;  %454 = vmatpush1.bf16.msra.mxu1 %v836_v22  ;;  %v876_v54 = vld [vmem:[#allocation8 + $0x8] sm:$0xff]   ;;  %v878_v56 = vld [vmem:[#allocation8 + $0x10] sm:$0xff]   ;;  %v879_v57 = vld [vmem:[#allocation8 + $0x58] sm:$0xff]   ;;  %v1121_v2 = vsub.s32 0, %v105_v1  ;;  %v110_v4 = vsub.s32 1, %v105_v1 }
  0x5d   :  { %204 = vmatprep.subr.bf16.mxu0 %v816_v15  ;;  %455 = vmatprep.subr.bf16.mxu1 %v837_v24  ;;  %v880_v58 = vld [vmem:[#allocation8 + $0x18] sm:$0xff]   ;;  %v881_v59 = vld [vmem:[#allocation8 + $0x60] sm:$0xff]   ;;  %v883_v61 = vld [vmem:[#allocation8 + $0x68] sm:$0xff]  }
  0x5e   :  { %v882_v60 = vld [vmem:[#allocation8 + $0x20] sm:$0xff]   ;;  %v884_v62 = vld [vmem:[#allocation8 + $0x28] sm:$0xff]   ;;  %v102_v3 = vld [vmem:[%s1153_s2] sm:$0x3] }
  0x5f   :  { %v107_v5 = vrot.slane %v102_v3, %v1121_v2  ;;  %v111_v6 = vrot.slane %v102_v3, %v110_v4  ;;  %v886_v20 = vld [vmem:[#allocation8 + $0x30] sm:$0xff]   ;;  %v888_v22 = vld [vmem:[#allocation8 + $0x38] sm:$0xff]  }
  0x60   :  { %205 = vmatpush1.bf16.msra.mxu0 %v818_v17  ;;  %456 = vmatpush1.bf16.msra.mxu1 %v839_v27 }
  0x61   :  { %206 = vmatprep.subr.bf16.mxu0 %v819_v19  ;;  %457 = vmatprep.subr.bf16.mxu1 %v840_v28  ;;  %v885_v19 = vld [vmem:[#allocation8 + $0x70] sm:$0xff]  }
  0x64   :  { %207 = vmatpush1.bf16.msra.mxu0 %v821_v21  ;;  %458 = vmatpush1.bf16.msra.mxu1 %v842_v29  ;;  %v887_v21 = vld [vmem:[#allocation8 + $0x78] sm:$0xff]  }
  0x65   :  { %208 = vmatprep.subr.bf16.mxu0 %v822_v23  ;;  %459 = vmatprep.subr.bf16.mxu1 %v843_v31  ;;  %v275_v23 = vld [vmem:[%s1155_s4] sm:$0x3] }
  0x66   :  { %v280_v24 = vrot.slane %v275_v23, %v1121_v2 }
  0x68   :  { %209 = vmatpush1.bf16.msra.mxu0 %v824_v25  ;;  %460 = vmatpush1.bf16.msra.mxu1 %v845_v32  ;;  %v284_v25 = vrot.slane %v275_v23, %v110_v4 }
  0x69   :  { %461 = vmatprep.subr.bf16.mxu1 %v846_v33  ;;  %769 = vmatprep.subr.bf16.mxu0 %v873_v51 }
  0x6b   :  { %227 = vmatmul.mubr.bf16.vlgmr.msra.gmra.mrb[0].mxu0 %v85_v30 }
  0x6c   :  { %462 = vmatpush1.bf16.msra.mxu1 %v848_v34  ;;  %770 = vmatpush3.bf16.msra.mxu0 %v874_v52 }
  0x6d   :  { %463 = vmatprep.subr.bf16.mxu1 %v849_v35  ;;  %771 = vmatprep.subr.bf16.mxu0 %v875_v53 }
  0x70   :  { %464 = vmatpush1.bf16.msra.mxu1 %v851_v36  ;;  %772 = vmatpush3.bf16.msra.mxu0 %v876_v54 }
  0x71   :  { %465 = vmatprep.subr.bf16.mxu1 %v852_v37  ;;  %773 = vmatprep.subr.bf16.mxu0 %v877_v55 }
  0x74   :  { %466 = vmatpush1.bf16.msra.mxu1 %v854_v38  ;;  %774 = vmatpush3.bf16.msra.mxu0 %v878_v56 }
  0x75   :  { %467 = vmatprep.subr.bf16.mxu1 %v855_v39  ;;  %775 = vmatprep.subr.bf16.mxu0 %v879_v57  ;;  %v752_v39 = vld [vmem:[%s1157_s6] ss:$0 sm:$0xff]  ;;  %s1020_s6 = smov [#allocation10]  }
  0x76   :  { %s693_s14 = sshll.u32 %s1020_s6, 4  ;;  %s694_s14 = int_to_ptr.vmem [resolvable:$true] %s693_s14 }
  0x77   :  { %s981_s17 = scalar_lea.vmem %s694_s14, 128  ;;  %p986_p5 = scmp.lt.s32.totalorder %s694_s14, %s694_s14 }
  0x78   :  { %468 = vmatpush1.bf16.msra.mxu1 %v857_v40  ;;  %776 = vmatpush3.bf16.msra.mxu0 %v880_v58  ;;  %p982_p4 = scmp.ne.s32.totalorder %s694_s14, %s981_s17  ;;  %p987_p6 = scmp.lt.s32.totalorder %s981_s17, %s981_s17 }
  0x79   :  { %469 = vmatprep.subr.bf16.mxu1 %v858_v41  ;;  %777 = vmatprep.subr.bf16.mxu0 %v881_v59 }
  0x7a   :  { %p988_p7 = por %p987_p6, %p986_p5 }
  0x7c   :  { %470 = vmatpush1.bf16.msra.mxu1 %v860_v42  ;;  %778 = vmatpush3.bf16.msra.mxu0 %v882_v60  ;;  %p989_p8 = pnand %p988_p7, %p982_p4 }
  0x7d   :  { %471 = vmatprep.subr.bf16.mxu1 %v861_v43  ;;  %779 = vmatprep.subr.bf16.mxu0 %v883_v61 }
  0x80   :  { %472 = vmatpush1.bf16.msra.mxu1 %v863_v44  ;;  %780 = vmatpush3.bf16.msra.mxu0 %v884_v62 }
  0x81   :  { %473 = vmatprep.subr.bf16.mxu1 %v864_v45  ;;  %781 = vmatprep.subr.bf16.mxu0 %v885_v19 }
  0x84   :  { %474 = vmatpush1.bf16.msra.mxu1 %v866_v46  ;;  %782 = vmatpush3.bf16.msra.mxu0 %v886_v20 }
  0x85   :  { %475 = vmatprep.subr.bf16.mxu1 %v867_v47  ;;  %783 = vmatprep.subr.bf16.mxu0 %v887_v21  ;;  %v677_v47 = vld [vmem:[%s1158_s7] sm:$0x1] }
  0x86   :  { %vm678_vm4 = vcmp.gt.f32.partialorder %v677_v47, 0.0 }
  0x88   :  { %476 = vmatpush1.bf16.msra.mxu1 %v869_v48  ;;  %784 = vmatpush3.bf16.msra.mxu0 %v888_v22 }
  0x89   :  { %477 = vmatprep.subr.bf16.mxu1 %v870_v49 }
  0x8c   :  { %478 = vmatpush1.bf16.msra.mxu1 %v872_v50  ;;  %v679_v50 = vsel %vm678_vm4, 1, %v1019_v0 }
  0x8d   :  { %v683_v51 = vrot.slane %v679_v50, %v1121_v2 }
  0x8f   :  { %vm684_vm5 = vcmp.eq.s32.totalorder %v683_v51, 1 }
 0x13e   :  { %v228_v7 = vpop.f32.mrb[0].mxu0 }
 0x13f   :  { %v229_v8 = vadd.f32 %v228_v7, %v107_v5  ;;  %v230_v9 = vpop.f32.mrb[1].mxu0 }
 0x140   :  { %v231_v10 = vadd.f32 %v230_v9, %v111_v6  ;;  %v232_v11 = vpop.f32.mrb[2].mxu0 }
 0x141   :  { %vm235_vm0 = vcmp.gt.f32.partialorder %v229_v8, 0.0  ;;  %v237_v12 = vmul.f32 0.01, %v229_v8  ;;  %v233_v13 = vpop.f32.mrb[3].mxu0 }
 0x142   :  { %vm236_vm1 = vcmp.gt.f32.partialorder %v231_v10, 0.0  ;;  %v238_v14 = vmul.f32 0.01, %v231_v10 }
 0x143   :  { %v239_v15 = vsel %vm235_vm0, %v229_v8, %v237_v12 }
 0x144   :  { %v240_v16 = vsel %vm236_vm1, %v231_v10, %v238_v14  ;;  %v241_v18 = vpack.c.bf16 %v239_v15, %v239_v15 }
 0x145   :  { %v242_v17 = vpack.c.bf16 %v240_v16, %v240_v16 }
 0x147   :  { %479 = vmatprep.mubr.bf16.mxu1 %v242_v17 }
 0x148   :  { %480 = vmatmul.mubr.bf16.vlgmr.msra.gmra.mrb[0].mxu1 %v241_v18 }
 0x21b   :  { %v481_v26 = vpop.f32.mrb[0].mxu1 }
 0x21c   :  { %v482_v27 = vadd.f32 %v481_v26, %v280_v24  ;;  %v483_v28 = vpop.f32.mrb[1].mxu1 }
 0x21d   :  { %v484_v29 = vadd.f32 %v483_v28, %v284_v25  ;;  %v485_v30 = vpop.f32.mrb[2].mxu1 }
 0x21e   :  { %vm488_vm2 = vcmp.gt.f32.partialorder %v482_v27, 0.0  ;;  %v490_v31 = vmul.f32 0.01, %v482_v27  ;;  %v486_v32 = vpop.f32.mrb[3].mxu1 }
 0x21f   :  { %vm489_vm3 = vcmp.gt.f32.partialorder %v484_v29, 0.0  ;;  %v491_v33 = vmul.f32 0.01, %v484_v29 }
 0x220   :  { %v492_v34 = vsel %vm488_vm2, %v482_v27, %v490_v31 }
 0x221   :  { %v493_v35 = vsel %vm489_vm3, %v484_v29, %v491_v33  ;;  %v494_v37 = vpack.c.bf16 %v492_v34, %v492_v34 }
 0x222   :  { %v495_v36 = vpack.c.bf16 %v493_v35, %v493_v35 }
 0x224   :  { %663 = vmatprep.mubr.bf16.mxu0 %v495_v36 }
 0x225   :  { %664 = vmatmul.mubr.bf16.vlgmr.msra.gmra.mrb[4].mxu0 %v494_v37 }
 0x2f8   :  { %v785_v38 = vpop.f32.mrb[4].mxu0 }
 0x2f9   :  { %v786_v40 = vpop.f32.mrb[5].mxu0 }
 0x2fa   :  { %v787_v41 = vadd.f32 %v786_v40, %v785_v38  ;;  %v788_v42 = vpop.f32.mrb[6].mxu0 }
 0x2fb   :  { %v789_v43 = vpop.f32.mrb[7].mxu0 }
 0x2fc   :  { %v666_v44 = vadd.f32 %v787_v41, %v752_v39 }
 0x2fe   :  { %v671_v45 = vsub.f32 0.0, %v666_v44 }
 0x300   :  { %v672_v46 = vmul.f32 1.442695, %v671_v45 }
 0x302   :  { %889 = vpow2.f32 %v672_v46 }
 0x30c   :  { %v890_v48 = vpop.eup %889 }
 0x30d   :  { %v674_v49 = vadd.f32 1.0, %v890_v48 }
 0x30f   :  { %891 = vrcp.f32 %v674_v49 }
 0x319   :  { %v892_v52 = vpop.eup %891 }
 0x31a   :  { %v685_v53 = vsel %vm684_vm5, %v892_v52, %v666_v44 }
 0x31b   :  { %686 = vst [vmem:[#allocation10] sm:$0xff] %v685_v53 }
 0x31c   :  { %992 = shalt.err (!%p989_p8)
}
 0x31d   :  { %s993_s19 = scalar_lea.hbm %s1159_s8, 128 }
 0x31e   :  { %p994_p9 = scmp.ne.s32.totalorder %s1159_s8, %s993_s19  ;;  %p997_p10 = scmp.lt.u32.totalorder %s993_s19, %s1159_s8 }
 0x320   :  { %p999_p11 = pnand %p997_p10, %p994_p9 }
 0x322   :  { %1002 = shalt.err (!%p999_p11)
}
 0x323   :  { %696 = dma.vmem_to_hbm [thread:$0]  %s694_s14, 128, %s1159_s8, [#allocation4]  }
 0x324   :  { %1009 = dma.done.wait [#allocation4], 128  }
 0x325   :  { %1010 = vsyncadd [#allocation4], 4294967168 }
 0x326   :  { %700 = vsyncpa [#allocation3], 1 }
 0x327   :  { %701 = vsyncpa [#allocation6], 1 }
 0x328   :  { %702 = vsyncpa [#allocation9], 1 }
 0x329   :  { %703 = vsyncpa [#allocation4], 1 }

</bundles_post_ra>
